<compile_context>
chip_gen: v7x
topology: tpu7x:2x2x1
jax: 0.10.0
libtpu: 0.0.40
codegen_flags: <defaults>
</compile_context>

<pallas_src>
import jax
import jax.numpy as jnp
from jax import lax
from jax.experimental import pallas as pl
from jax.experimental.pallas import tpu as pltpu


def _attention_kernel(s_ref, enc_ref, was_ref, wae_ref, wv_ref, attn_ref, ctx_ref):
    # Per grid step (one block of BB batch rows):
    #   s_ref   : (BB, Hdec)      bf16   decoder hidden states
    #   enc_ref : (BB, L, Henc)   bf16   encoder outputs, batch-major (transpose hoisted)
    #   was_ref : (Hdec, T)       bf16   attn-weight columns acting on s   (pre-transposed)
    #   wae_ref : (Henc, T)       bf16   attn-weight columns acting on enc (pre-transposed)
    #   wv_ref  : (1, T)          f32    v weight (elementwise path stays f32)
    #   attn_ref: (BB, L)         f32    softmax attention over L (lane-dense)
    #   ctx_ref : (BB, Henc)      f32    fused weighted context  sum_l attn[b,l]*enc[b,l,:]
    enc = enc_ref[...]                                                     # (BB, L, Henc) bf16

    # proj_s: one small matmul per step, broadcast over L below.
    proj_s = jnp.dot(s_ref[...], was_ref[...],
                     preferred_element_type=jnp.float32)                   # (BB, T) f32

    # proj_e: single plain contraction, M = BB*L on the MXU (no broadcast weight copy).
    proj_e = lax.dot_general(enc, wae_ref[...],
                             dimension_numbers=(((2,), (0,)), ((), ())),
                             preferred_element_type=jnp.float32)           # (BB, L, T) f32

    # energy = tanh([s_rep, enc] @ W_attn^T)   (split-matmul == concat formulation)
    energy = jnp.tanh(proj_e + proj_s[:, None, :])                         # (BB, L, T) f32

    # score[b, l] = sum_t energy[b, l, t] * wv[t]   (VPU mul + lane reduction)
    score = jnp.sum(energy * wv_ref[...][None, :, :], axis=-1)             # (BB, L) f32

    # Softmax over the source-length axis (now the lane axis) -- max-stabilized,
    # exact reciprocal (approx=True could break the 1e-5 rows-sum-to-1 tolerance).
    m = jnp.max(score, axis=-1, keepdims=True)
    e = jnp.exp(score - m)
    denom = jnp.sum(e, axis=-1, keepdims=True)
    attn = e * pl.reciprocal(denom, approx=False)                          # (BB, L) f32
    attn_ref[...] = attn

    # Fused downstream context: reuse the enc block already resident in VMEM.
    p = attn.astype(enc.dtype)[:, None, :]                                 # (BB, 1, L) bf16
    ctx = jnp.einsum('bql,bld->bqd', p, enc,
                     preferred_element_type=jnp.float32)                   # (BB, 1, Henc) f32
    ctx_ref[...] = ctx[:, 0, :]


def _step_vmem_bytes(bb, L, Henc, Hdec, T, enc_itemsize=2):
    """Rough per-grid-step VMEM working set (double-buffered streams + f32 intermediates)."""
    return (2 * bb * L * Henc * enc_itemsize        # enc block, double-buffered
            + 2 * bb * Hdec * enc_itemsize          # s block, double-buffered
            + 2 * bb * (L + Henc) * 4               # f32 outputs, double-buffered
            + bb * L * T * 4                        # f32 energy intermediate
            + (Hdec + Henc + 2) * T * 4)            # weights + slack


def _pick_batch_block(B, L, Henc, Hdec, T, vmem_budget_bytes=24 * 2**20):
    """Largest batch block that (a) satisfies the (8,128) block constraint (multiple of 8
    or the full batch), (b) divides B, (c) fits the per-step VMEM budget (conservative
    for v7x 64 MiB / v5e's 16 MiB scoped default), and (d) when B >= 16 leaves >= 2 grid
    steps so both v7x TensorCores get work under dimension_semantics='parallel'."""
    valid = [bb for bb in range(8, B, 8) if B % bb == 0] + [B]
    fitting = [bb for bb in valid
               if _step_vmem_bytes(bb, L, Henc, Hdec, T) <= vmem_budget_bytes]
    pool = fitting if fitting else valid[:1]   # worst case: smallest valid block
    if B >= 16:
        split = [bb for bb in pool if bb <= B // 2]
        if split:
            return max(split)
    return max(pool)


def prepare_attention_params(w_attn, w_v, out_hid_dim, compute_dtype=jnp.bfloat16):
    """Hoisted once per parameter set (NOT per decode step).

    w_attn: (T, out_hid_dim + 2*in_hid_dim)  torch Linear weight layout [out, in]
    w_v   : (1, T)
    returns (was, wae, wv):
      was: (Hdec, T) bf16  columns of w_attn matching `s` in the concat, transposed
      wae: (Henc, T) bf16  columns of w_attn matching encoder outputs, transposed
      wv : (1, T)   f32    v weight (stays f32: elementwise path, v5e VPU has no bf16)
    """
    was = jnp.asarray(w_attn[:, :out_hid_dim].T, dtype=compute_dtype)
    wae = jnp.asarray(w_attn[:, out_hid_dim:].T, dtype=compute_dtype)
    wv = jnp.asarray(w_v, dtype=jnp.float32)
    return was, wae, wv


def prepare_encoder(in_output, compute_dtype=jnp.bfloat16):
    """Hoisted once per encoded sequence (amortized over all decoder steps):
    seq-major (L, B, Henc) f32  ->  batch-major (B, L, Henc) bf16."""
    return jnp.transpose(in_output, (1, 0, 2)).astype(compute_dtype)


def attention_forward(s, enc_bm, was, wae, wv):
    """Pallas-backed forward.

    s      : (B, Hdec)            decoder hidden state for this decode step
    enc_bm : (B, L, Henc) bf16    batch-major encoder outputs from prepare_encoder()
    was, wae, wv                  weights from prepare_attention_params()
    returns (attn, context):
      attn    : (B, L)    f32  -- the module's softmax output (forward semantics unchanged)
      context : (B, Henc) f32  -- fused weighted context (free byproduct of the resident enc)
    """
    B, Hdec = s.shape
    B2, L, Henc = enc_bm.shape
    assert B == B2, "batch mismatch between s and enc_bm"
    T = was.shape[1]

    s = s.astype(was.dtype)          # small per-step cast; enc/weights already narrow

    BB = _pick_batch_block(B, L, Henc, Hdec, T)
    grid = (B // BB,)

    need = _step_vmem_bytes(BB, L, Henc, Hdec, T)
    vmem_limit = int(min(max(int(1.5 * need), 32 * 2**20), 128 * 2**20))

    cost = pl.CostEstimate(
        flops=(2 * B * L * Henc * T      # encoder projection matmul
               + 2 * B * Hdec * T        # decoder-state projection matmul
               + 4 * B * L * T           # add + wv multiply/reduce
               + 2 * B * L * Henc),      # fused context matmul
        transcendentals=B * L * T + B * L,           # tanh + exp
        bytes_accessed=(B * L * Henc * enc_bm.dtype.itemsize
                        + B * Hdec * s.dtype.itemsize
                        + (Hdec + Henc) * T * was.dtype.itemsize + T * 4
                        + B * L * 4 + B * Henc * 4),
    )

    attn, ctx = pl.pallas_call(
        _attention_kernel,
        out_shape=(jax.ShapeDtypeStruct((B, L), jnp.float32),
                   jax.ShapeDtypeStruct((B, Henc), jnp.float32)),
        grid=grid,
        in_specs=[
            pl.BlockSpec((BB, Hdec), lambda b: (b, 0)),
            pl.BlockSpec((BB, L, Henc), lambda b: (b, 0, 0)),
            pl.BlockSpec((Hdec, T), lambda b: (0, 0)),
            pl.BlockSpec((Henc, T), lambda b: (0, 0)),
            pl.BlockSpec((1, T), lambda b: (0, 0)),
        ],
        out_specs=(pl.BlockSpec((BB, L), lambda b: (b, 0)),
                   pl.BlockSpec((BB, Henc), lambda b: (b, 0))),
        compiler_params=pltpu.CompilerParams(
            dimension_semantics=("parallel",),
            vmem_limit_bytes=vmem_limit,
        ),
        cost_estimate=cost,
    )(s, enc_bm, was, wae, wv)
    return attn, ctx


def attention_ref(s, in_output, w_attn, w_v):
    """Pure-JAX reference mirroring the PyTorch forward (f32 throughout)."""
    L = in_output.shape[0]
    s_rep = jnp.repeat(s[:, None, :], L, axis=1)              # (B, L, Hdec)
    enc = jnp.transpose(in_output, (1, 0, 2))                  # (B, L, Henc)
    cat = jnp.concatenate([s_rep, enc], axis=2)                # (B, L, Hdec+Henc)
    energy = jnp.tanh(cat @ w_attn.T)                          # (B, L, T)
    attn = (energy @ w_v.T)[..., 0]                            # (B, L)
    return jax.nn.softmax(attn, axis=1)


if __name__ == "__main__":
    # Small shapes consistent with the module:
    in_hid_dim = 16          # encoder hidden -> bidirectional features = 32
    out_hid_dim = 32         # decoder hidden
    temp_dim = 32
    B = 2                    # batch
    L = 8                    # source sequence length

    key = jax.random.PRNGKey(0)
    k_s, k_enc, k_wa, k_wv = jax.random.split(key, 4)

    s = jax.random.normal(k_s, (B, out_hid_dim), dtype=jnp.float32)
    in_output = jax.random.normal(k_enc, (L, B, 2 * in_hid_dim), dtype=jnp.float32)

    # Deterministic synthetic parameters (torch Linear weight layout [out_features, in_features]).
    in_feat = 2 * in_hid_dim + out_hid_dim
    bound_a = 1.0 / jnp.sqrt(jnp.float32(in_feat))
    bound_v = 1.0 / jnp.sqrt(jnp.float32(temp_dim))
    w_attn = jax.random.uniform(k_wa, (temp_dim, in_feat), jnp.float32, -bound_a, bound_a)
    w_v = jax.random.uniform(k_wv, (1, temp_dim), jnp.float32, -bound_v, bound_v)

    # One-time prep (outside the per-decode-step path): weight split/transpose/cast and
    # encoder transpose/cast, both amortized over all decoder steps.
    was, wae, wv = prepare_attention_params(w_attn, w_v, out_hid_dim)
    enc_bm = prepare_encoder(in_output)

    attn, ctx = attention_forward(s, enc_bm, was, wae, wv)
    attn = jax.block_until_ready(attn)
    ctx = jax.block_until_ready(ctx)

    assert attn.shape == (B, L)
    assert ctx.shape == (B, 2 * in_hid_dim)

    # Reference 1: same bf16 input rounding as the kernel, math in f32 -> tight tolerance.
    s_b = s.astype(jnp.bfloat16).astype(jnp.float32)
    in_b = in_output.astype(jnp.bfloat16).astype(jnp.float32)
    wa_b = w_attn.astype(jnp.bfloat16).astype(jnp.float32)
    ref_b = attention_ref(s_b, in_b, wa_b, w_v)
    assert jnp.allclose(attn, ref_b, atol=1e-4), "Pallas kernel mismatch vs bf16-cast reference"

    # Reference 2: pure f32 pipeline -> loose tolerance (bf16 streaming error only).
    ref_f32 = attention_ref(s, in_output, w_attn, w_v)
    assert jnp.allclose(attn, ref_f32, atol=2e-2), "Pallas kernel mismatch vs f32 reference"

    # Softmax rows must sum to 1 (exact reciprocal in-kernel).
    assert jnp.allclose(jnp.sum(attn, axis=1), 1.0, atol=1e-5), "softmax rows must sum to 1"

    # Fused context check (matched precision: bf16 probabilities x bf16 enc, f32 accumulation).
    exp_ctx = jnp.einsum('bl,bld->bd',
                         attn.astype(jnp.bfloat16).astype(jnp.float32),
                         enc_bm.astype(jnp.float32))
    assert jnp.allclose(ctx, exp_ctx, atol=1e-4), "fused context mismatch vs reference"

    print("KERNEL_OK")
</pallas_src>

<mosaic_0001>
module attributes {stable_mosaic.version = 11 : i64} {
  func.func @_attention_kernel(%arg0: i32, %arg1: memref<2x32xbf16, #tpu.memory_space<vmem>>, %arg2: memref<2x8x32xbf16, #tpu.memory_space<vmem>>, %arg3: memref<32x32xbf16, #tpu.memory_space<vmem>>, %arg4: memref<32x32xbf16, #tpu.memory_space<vmem>>, %arg5: memref<1x32xf32, #tpu.memory_space<vmem>>, %arg6: memref<2x8xf32, #tpu.memory_space<vmem>>, %arg7: memref<2x32xf32, #tpu.memory_space<vmem>>) attributes {dimension_semantics = [#tpu.dimension_semantics<parallel>], iteration_bounds = array<i64: 1>, scalar_prefetch = 0 : i64, scratch_operands = 0 : i64, tpu.core_type = #tpu.core_type<tc>, window_params = [{transform_indices = @transform_0, window_bounds = array<i64: 2, 32>}, {transform_indices = @transform_1, window_bounds = array<i64: 2, 8, 32>}, {pipeline_mode = #tpu.pipeline_mode<synchronous>, transform_indices = @transform_2, window_bounds = array<i64: 32, 32>}, {pipeline_mode = #tpu.pipeline_mode<synchronous>, transform_indices = @transform_3, window_bounds = array<i64: 32, 32>}, {pipeline_mode = #tpu.pipeline_mode<synchronous>, transform_indices = @transform_4, window_bounds = array<i64: 1, 32>}, {transform_indices = @transform_5, window_bounds = array<i64: 2, 8>}, {transform_indices = @transform_6, window_bounds = array<i64: 2, 32>}]} {
    %c0 = arith.constant 0 : index
    %c0_0 = arith.constant 0 : index
    %c0_1 = arith.constant 0 : index
    %0 = vector.load %arg2[%c0, %c0_0, %c0_1] : memref<2x8x32xbf16, #tpu.memory_space<vmem>>, vector<2x8x32xbf16>
    %c0_2 = arith.constant 0 : index
    %c0_3 = arith.constant 0 : index
    %1 = vector.load %arg1[%c0_2, %c0_3] : memref<2x32xbf16, #tpu.memory_space<vmem>>, vector<2x32xbf16>
    %c0_4 = arith.constant 0 : index
    %c0_5 = arith.constant 0 : index
    %2 = vector.load %arg3[%c0_4, %c0_5] : memref<32x32xbf16, #tpu.memory_space<vmem>>, vector<32x32xbf16>
    %cst = arith.constant dense<0.000000e+00> : vector<2x32xf32>
    %3 = tpu.matmul %1, %2, %cst {dimension_numbers = #tpu.dot_dimension_numbers<[1], [0], [0], [1], [0, 0, 1, 1], [], []>} : vector<2x32xbf16>, vector<32x32xbf16>, vector<2x32xf32> -> vector<2x32xf32>
    %c0_6 = arith.constant 0 : index
    %c0_7 = arith.constant 0 : index
    %4 = vector.load %arg4[%c0_6, %c0_7] : memref<32x32xbf16, #tpu.memory_space<vmem>>, vector<32x32xbf16>
    %cst_8 = arith.constant dense<0.000000e+00> : vector<2x8x32xf32>
    %5 = tpu.matmul %0, %4, %cst_8 {dimension_numbers = #tpu.dot_dimension_numbers<[2], [0], [0, 1], [1], [0, 0, 0, 1, 1, 1], [], []>} : vector<2x8x32xbf16>, vector<32x32xbf16>, vector<2x8x32xf32> -> vector<2x8x32xf32>
    %6 = vector.shape_cast %3 : vector<2x32xf32> to vector<2x1x32xf32>
    %7 = vector.broadcast %6 : vector<2x1x32xf32> to vector<2x8x32xf32>
    %8 = arith.addf %5, %7 : vector<2x8x32xf32>
    %9 = math.tanh %8 : vector<2x8x32xf32>
    %c0_9 = arith.constant 0 : index
    %c0_10 = arith.constant 0 : index
    %10 = vector.load %arg5[%c0_9, %c0_10] : memref<1x32xf32, #tpu.memory_space<vmem>>, vector<1x32xf32>
    %11 = vector.shape_cast %10 : vector<1x32xf32> to vector<1x1x32xf32>
    %12 = vector.broadcast %11 : vector<1x1x32xf32> to vector<2x8x32xf32>
    %13 = arith.mulf %9, %12 : vector<2x8x32xf32>
    %cst_11 = arith.constant dense<0.000000e+00> : vector<2x8xf32>
    %14 = vector.multi_reduction <add>, %13, %cst_11 [2] : vector<2x8x32xf32> to vector<2x8xf32>
    %cst_12 = arith.constant dense<0xFF800000> : vector<2xf32>
    %15 = vector.multi_reduction <maximumf>, %14, %cst_12 [1] : vector<2x8xf32> to vector<2xf32>
    %16 = vector.shape_cast %15 : vector<2xf32> to vector<2x1xf32>
    %17 = vector.broadcast %16 : vector<2x1xf32> to vector<2x8xf32>
    %18 = arith.subf %14, %17 : vector<2x8xf32>
    %19 = math.exp %18 : vector<2x8xf32>
    %cst_13 = arith.constant dense<0.000000e+00> : vector<2xf32>
    %20 = vector.multi_reduction <add>, %19, %cst_13 [1] : vector<2x8xf32> to vector<2xf32>
    %21 = vector.shape_cast %20 : vector<2xf32> to vector<2x1xf32>
    %22 = tpu.reciprocal %21 : vector<2x1xf32> -> vector<2x1xf32>
    %23 = vector.broadcast %22 : vector<2x1xf32> to vector<2x8xf32>
    %24 = arith.mulf %19, %23 : vector<2x8xf32>
    %c0_14 = arith.constant 0 : index
    %c0_15 = arith.constant 0 : index
    %25 = vector.load %arg6[%c0_14, %c0_15] : memref<2x8xf32, #tpu.memory_space<vmem>>, vector<2x8xf32>
    tpu.vector_store %arg6[%c0_14, %c0_15], %24 {strides = array<i32>} : memref<2x8xf32, #tpu.memory_space<vmem>>, vector<2x8xf32>,
    %26 = arith.truncf %24 : vector<2x8xf32> to vector<2x8xbf16>
    %27 = vector.shape_cast %26 : vector<2x8xbf16> to vector<2x1x8xbf16>
    "tpu.trace_start"() <{level = 10 : i32, message = "bql,bld->bqd"}> : () -> ()
    %cst_16 = arith.constant dense<0.000000e+00> : vector<2x1x32xf32>
    %28 = tpu.matmul %27, %0, %cst_16 {dimension_numbers = #tpu.dot_dimension_numbers<[2], [1], [1], [2], [0, 0, 0, 1, 1, 2], [0], [0]>} : vector<2x1x8xbf16>, vector<2x8x32xbf16>, vector<2x1x32xf32> -> vector<2x1x32xf32>
    "tpu.trace_stop"() : () -> ()
    %29 = vector.shape_cast %28 : vector<2x1x32xf32> to vector<2x32xf32>
    %c0_17 = arith.constant 0 : index
    %c0_18 = arith.constant 0 : index
    %30 = vector.load %arg7[%c0_17, %c0_18] : memref<2x32xf32, #tpu.memory_space<vmem>>, vector<2x32xf32>
    tpu.vector_store %arg7[%c0_17, %c0_18], %29 {strides = array<i32>} : memref<2x32xf32, #tpu.memory_space<vmem>>, vector<2x32xf32>,
    return
  }
  func.func @transform_0(%arg0: i32) -> (i32, i32) {
    %c0_i32 = arith.constant 0 : i32
    %c0_i32_0 = arith.constant 0 : i32
    return %arg0, %c0_i32 : i32, i32
  }
  func.func @transform_1(%arg0: i32) -> (i32, i32, i32) {
    %c0_i32 = arith.constant 0 : i32
    %c0_i32_0 = arith.constant 0 : i32
    %c0_i32_1 = arith.constant 0 : i32
    return %arg0, %c0_i32, %c0_i32_0 : i32, i32, i32
  }
  func.func @transform_2(%arg0: i32) -> (i32, i32) {
    %c0_i32 = arith.constant 0 : i32
    %c0_i32_0 = arith.constant 0 : i32
    %c0_i32_1 = arith.constant 0 : i32
    return %c0_i32, %c0_i32_0 : i32, i32
  }
  func.func @transform_3(%arg0: i32) -> (i32, i32) {
    %c0_i32 = arith.constant 0 : i32
    %c0_i32_0 = arith.constant 0 : i32
    %c0_i32_1 = arith.constant 0 : i32
    return %c0_i32, %c0_i32_0 : i32, i32
  }
  func.func @transform_4(%arg0: i32) -> (i32, i32) {
    %c0_i32 = arith.constant 0 : i32
    %c0_i32_0 = arith.constant 0 : i32
    %c0_i32_1 = arith.constant 0 : i32
    return %c0_i32, %c0_i32_0 : i32, i32
  }
  func.func @transform_5(%arg0: i32) -> (i32, i32) {
    %c0_i32 = arith.constant 0 : i32
    %c0_i32_0 = arith.constant 0 : i32
    return %arg0, %c0_i32 : i32, i32
  }
  func.func @transform_6(%arg0: i32) -> (i32, i32) {
    %c0_i32 = arith.constant 0 : i32
    %c0_i32_0 = arith.constant 0 : i32
    return %arg0, %c0_i32 : i32, i32
  }
}

</mosaic_0001>

<bundles_post_ra>
// kernel: tpu_custom_call.1
= control target key start
LH: loop header
LB: loop body
LE: loop exit
PB: predicated region body
PF: predicated region fallthrough
CT: control target
= control target key end

     0   :  { %12 = vsyncpa [#allocation3], 0  ;;  %s895_s0 = inlined_call_operand.hbm [shape: bf16[2,32], index: 0, kind: input, shape index: {}]   ;;  %s896_s1 = inlined_call_operand.hbm [shape: bf16[2,8,32], index: 1, kind: input, shape index: {}]   ;;  %s897_s2 = inlined_call_operand.hbm [shape: bf16[32,32], index: 2, kind: input, shape index: {}]   ;;  %s898_s3 = inlined_call_operand.hbm [shape: bf16[32,32], index: 3, kind: input, shape index: {}]   ;;  %s899_s4 = inlined_call_operand.vmem [shape: f32[1,32], index: 4, kind: input, shape index: {}]   ;;  %s900_s5 = inlined_call_operand.hbm [shape: f32[2,8], index: 5, kind: output, shape index: {0}]   ;;  %s901_s6 = inlined_call_operand.hbm [shape: f32[2,32], index: 6, kind: output, shape index: {1}]  }
   0x1   :  { %13 = vsyncpa [#allocation6], 0 }
   0x2   :  { %14 = vsyncpa [#allocation9], 0 }
   0x3   :  { %15 = vsyncpa [#allocation4], 0 }
   0x4   :  { %16 = vsyncpa [#allocation12], 0  ;;  %s719_s21 = smov [#allocation5]   ;;  %s577_s25 = scalar_lea.hbm %s896_s1, 128 }
   0x5   :  { %s32_s22 = sshll.u32 %s719_s21, 4  ;;  %p578_p0 = scmp.ne.s32.totalorder %s896_s1, %s577_s25  ;;  %s33_s22 = int_to_ptr.vmem [resolvable:$true] %s32_s22 }
   0x6   :  { %p581_p1 = scmp.lt.u32.totalorder %s577_s25, %s896_s1 }
   0x8   :  { %p583_p2 = pnand %p581_p1, %p578_p0 }
   0xa   :  { %586 = shalt.err (!%p583_p2)
}
   0xb   :  { %s587_s30 = scalar_lea.vmem %s33_s22, 128  ;;  %p592_p4 = scmp.lt.s32.totalorder %s33_s22, %s33_s22 }
   0xc   :  { %p588_p3 = scmp.ne.s32.totalorder %s33_s22, %s587_s30  ;;  %p593_p5 = scmp.lt.s32.totalorder %s587_s30, %s587_s30 }
   0xe   :  { %p594_p6 = por %p593_p5, %p592_p4 }
  0x10   :  { %p595_p7 = pnand %p594_p6, %p588_p3 }
  0x12   :  { %598 = shalt.err (!%p595_p7)
}
  0x13   :  { %s720_s7 = smov 64   ;;  %s721_s8 = smov 4  }
  0x14   :  { %38 = dma.hbm_to_vmem [thread:$0]  %s896_s1, 128, %s33_s22, [#allocation6], %s720_s7, %s720_s7, %s721_s8  }
  0x15   :  { %s722_s11 = smov [#allocation2]   ;;  %s723_s13 = smov [#allocation7]  }
  0x16   :  { %s23_s12 = sshll.u32 %s722_s11, 4  ;;  %s44_s14 = sshll.u32 %s723_s13, 4  ;;  %s24_s12 = int_to_ptr.vmem [resolvable:$true] %s23_s12  ;;  %s45_s14 = int_to_ptr.vmem [resolvable:$true] %s44_s14 }
  0x17   :  { %s599_s17 = scalar_lea.hbm %s895_s0, 16 }
  0x18   :  { %p600_p8 = scmp.ne.s32.totalorder %s895_s0, %s599_s17  ;;  %p603_p9 = scmp.lt.u32.totalorder %s599_s17, %s895_s0 }
  0x1a   :  { %p605_p10 = pnand %p603_p9, %p600_p8 }
  0x1c   :  { %608 = shalt.err (!%p605_p10)
}
  0x1d   :  { %s609_s1 = scalar_lea.vmem %s24_s12, 16  ;;  %s613_s22 = scalar_lea.vmem %s24_s12, 32 }
  0x1e   :  { %p610_p11 = scmp.ne.s32.totalorder %s24_s12, %s609_s1  ;;  %p614_p12 = scmp.lt.s32.totalorder %s24_s12, %s24_s12 }
  0x1f   :  { %p615_p13 = scmp.lt.s32.totalorder %s613_s22, %s609_s1 }
  0x21   :  { %p616_p0 = por %p615_p13, %p614_p12 }
  0x23   :  { %p617_p1 = pnand %p616_p0, %p610_p11 }
  0x25   :  { %620 = shalt.err (!%p617_p1)
}
  0x26   :  { %26 = dma.hbm_to_vmem [thread:$0]  %s895_s0, 16, %s24_s12, [#allocation3]  }
  0x27   :  { %s621_s27 = scalar_lea.hbm %s897_s2, 256 }
  0x28   :  { %p622_p2 = scmp.ne.s32.totalorder %s897_s2, %s621_s27  ;;  %p625_p3 = scmp.lt.u32.totalorder %s621_s27, %s897_s2 }
  0x2a   :  { %p627_p4 = pnand %p625_p3, %p622_p2 }
  0x2c   :  { %630 = shalt.err (!%p627_p4)
}
  0x2d   :  { %s631_s10 = scalar_lea.vmem %s45_s14, 256  ;;  %p636_p6 = scmp.lt.s32.totalorder %s45_s14, %s45_s14 }
  0x2e   :  { %p632_p5 = scmp.ne.s32.totalorder %s45_s14, %s631_s10  ;;  %p637_p7 = scmp.lt.s32.totalorder %s631_s10, %s631_s10 }
  0x30   :  { %p638_p8 = por %p637_p7, %p636_p6 }
  0x32   :  { %p639_p9 = pnand %p638_p8, %p632_p5 }
  0x34   :  { %642 = shalt.err (!%p639_p9)
}
  0x35   :  { %50 = dma.hbm_to_vmem [thread:$0]  %s897_s2, 256, %s45_s14, [#allocation6], %s720_s7, %s720_s7, %s721_s8  }
  0x36   :  { %s724_s12 = smov [#allocation8]   ;;  %s643_s17 = scalar_lea.hbm %s898_s3, 256 }
  0x37   :  { %s56_s13 = sshll.u32 %s724_s12, 4  ;;  %p644_p10 = scmp.ne.s32.totalorder %s898_s3, %s643_s17  ;;  %s57_s13 = int_to_ptr.vmem [resolvable:$true] %s56_s13 }
  0x38   :  { %p647_p11 = scmp.lt.u32.totalorder %s643_s17, %s898_s3 }
  0x3a   :  { %p649_p12 = pnand %p647_p11, %p644_p10 }
  0x3c   :  { %652 = shalt.err (!%p649_p12)
}
  0x3d   :  { %s653_s1 = scalar_lea.vmem %s57_s13, 256  ;;  %p658_p0 = scmp.lt.s32.totalorder %s57_s13, %s57_s13 }
  0x3e   :  { %p654_p13 = scmp.ne.s32.totalorder %s57_s13, %s653_s1  ;;  %p659_p1 = scmp.lt.s32.totalorder %s653_s1, %s653_s1 }
  0x40   :  { %p660_p2 = por %p659_p1, %p658_p0 }
  0x42   :  { %p661_p3 = pnand %p660_p2, %p654_p13 }
  0x44   :  { %664 = shalt.err (!%p661_p3)
}
  0x45   :  { %62 = dma.hbm_to_vmem [thread:$0]  %s898_s3, 256, %s57_s13, [#allocation9], %s720_s7, %s720_s7, %s721_s8  }
  0x46   :  { %709 = dma.done.wait [#allocation3], 16  }
  0x47   :  { %710 = vsyncadd [#allocation3], 4294967280 }
  0x48   :  { %711 = dma.done.wait [#allocation6], 384  }
  0x49   :  { %712 = vsyncadd [#allocation6], 4294966912 }
  0x4a   :  { %713 = dma.done.wait [#allocation9], 256  }
  0x4b   :  { %714 = vsyncadd [#allocation9], 4294967040  ;;  %v725_v0 = vmov 0.0   ;;  %vm726_vm0 = vmmov 0   ;;  %v562_v1 = vld [vmem:[#allocation7] sm:$0xff]   ;;  %v563_v2 = vld [vmem:[#allocation8] sm:$0xff]   ;;  %v149_v11 = vlaneseq }
  0x4c   :  { %520 = vmatprep.subr.bf16.mxu0 %v725_v0  ;;  %528 = vmatprep.subr.bf16.mxu1 %v725_v0  ;;  %v564_v3 = vld [vmem:[#allocation7 + $0x8] sm:$0xff]   ;;  %v565_v4 = vld [vmem:[#allocation8 + $0x8] sm:$0xff]   ;;  %v80_v7 = vld [vmem:[#allocation2] sm:$0x1]  ;;  %vm97_vm1 = vcmask 261120   ;;  %vm268_vm2 = vcmask 1041409  }
  0x4d   :  { %524 = vmatprep.mubr.msk.bf16.mxu0 %vm726_vm0, %v725_v0  ;;  %532 = vmatprep.mubr.msk.bf16.mxu1 %vm726_vm0, %v725_v0  ;;  %v825_v5 = vld [vmem:[#allocation5] sm:$0xf]  ;;  %v827_v6 = vld [vmem:[#allocation5 + $0x4] sm:$0xf]  ;;  %v727_v9 = vmov 1966171168  }
  0x4e   :  { %521 = vmatpush3.bf16.msra.mxu0 %v562_v1  ;;  %529 = vmatpush3.bf16.msra.mxu1 %v563_v2  ;;  %v503_v8 = vcombine.low %v825_v5, %v827_v6  ;;  %v147_v10 = vunpack.c.l.s4 %v727_v9  ;;  %v835_v13 = vshrl.u32 %v149_v11, 7  ;;  %v507_v32 = vld [vmem:[%s899_s4] ss:$0 sm:$0xff]  ;;  %v259_v39 = vand.u32 127, %v149_v11  ;;  %s729_s4 = smov [#allocation10]  }
  0x4f   :  { %522 = vmatprep.subr.bf16.mxu0 %v725_v0  ;;  %530 = vmatprep.subr.bf16.mxu1 %v725_v0  ;;  %vm271_vm3 = vcmask 58368   ;;  %v728_v47 = vmov 0   ;;  %vm362_vm4 = vcmask 1043456   ;;  %vm358_vm5 = vcmask 64512   ;;  %s475_s8 = sshll.u32 %s729_s4, 4  ;;  %s476_s8 = int_to_ptr.vmem [resolvable:$true] %s475_s8 }
  0x50   :  { %v148_v12 = vunpack.c.0.s8 %v147_v10  ;;  %v839_v18 = vsub.s32 0, %v835_v13  ;;  %v849_v41 = vsub.s32 %v259_v39, %v835_v13  ;;  %561 = vset.pattern.permute.xlu0 %v728_v47  ;;  %560 = vset.pattern.permute.xlu1 %v728_v47  ;;  %v282_v48 = vsub.s32 1, %v835_v13  ;;  %s665_s22 = scalar_lea.vmem %s476_s8, 32  ;;  %p670_p5 = scmp.lt.s32.totalorder %s476_s8, %s476_s8 }
  0x51   :  { %v420_v9 = vsel %vm362_vm4, %v827_v6, 0  ;;  %p666_p4 = scmp.ne.s32.totalorder %s476_s8, %s665_s22  ;;  %p671_p6 = scmp.lt.s32.totalorder %s665_s22, %s665_s22 }
  0x52   :  { %523 = vmatpush3.bf16.msra.mxu0 %v564_v3  ;;  %531 = vmatpush3.bf16.msra.mxu1 %v565_v4  ;;  %v151_v14 = vsub.s32 %v148_v12, %v835_v13  ;;  %v364_v13 = vsel %vm362_vm4, %v825_v5, 0 }
  0x53   :  { %536 = vmatprep.subr.bf16.mxu0 %v725_v0  ;;  %542 = vmatprep.subr.bf16.mxu1 %v725_v0  ;;  %p672_p7 = por %p671_p6, %p670_p5 }
  0x55   :  { %525 = vmatmul.mubr.msk.bf16.vlgmr.msra.gmra.mrb[0].mxu0 %vm97_vm1, %v80_v7  ;;  %533 = vmatmul.mubr.msk.bf16.vlgmr.msra.gmra.mrb[0].mxu1 %vm97_vm1, %v503_v8  ;;  %p673_p8 = pnand %p672_p7, %p666_p4 }
  0x56   :  { %538 = vmatprep.mubr.msk.bf16.mxu0 %vm726_vm0, %v725_v0  ;;  %544 = vmatprep.mubr.msk.bf16.mxu1 %vm726_vm0, %v725_v0 }
  0x57   :  { %543 = vmatpush3.bf16.msra.mxu1 %v420_v9  ;;  %537 = vmatpush3.bf16.msra.mxu0 %v364_v13 }
 0x128   :  { %v135_v15 = vpop.f32.mrb[0].mxu0  ;;  %v232_v19 = vpop.f32.mrb[0].mxu1 }
 0x129   :  { %v152_v16 = vrot.slane %v135_v15, %v151_v14  ;;  %v526_v17 = vpop.f32.mrb[1].mxu0  ;;  %v534_v21 = vpop.f32.mrb[1].mxu1 }
 0x12a   :  { %v138_v20 = vpop.f32.mrb[2].mxu0  ;;  %v235_v25 = vpop.f32.mrb[2].mxu1 }
 0x12b   :  { %v153_v22 = vcombine.high %v152_v16, %v152_v16  ;;  %v160_v23 = vrot.slane %v152_v16, %v151_v14  ;;  %v527_v24 = vpop.f32.mrb[3].mxu0  ;;  %v535_v26 = vpop.f32.mrb[3].mxu1 }
 0x12d   :  { %v171_v27 = vrot.slane %v160_v23, %v839_v18  ;;  %v167_v28 = vrot.slane %v153_v22, %v151_v14 }
 0x12f   :  { %v233_v29 = vadd.f32 %v232_v19, %v171_v27  ;;  %v175_v30 = vrot.slane %v167_v28, %v839_v18 }
 0x131   :  { %567 = vtanh.f32 %v233_v29  ;;  %v236_v31 = vadd.f32 %v235_v25, %v175_v30 }
 0x133   :  { %569 = vtanh.f32 %v236_v31 }
 0x13b   :  { %v568_v33 = vpop.eup %567 }
 0x13c   :  { %v248_v34 = vmul.f32 %v568_v33, %v507_v32 }
 0x13d   :  { %v570_v35 = vpop.eup %569 }
 0x13e   :  { %v250_v36 = vsel %vm97_vm1, %v248_v34, 0.0  ;;  %v249_v37 = vmul.f32 %v570_v35, %v507_v32 }
 0x13f   :  { %251 = vadd.xlane.f32.xlu0 %v250_v36 }
 0x140   :  { %v253_v38 = vsel %vm97_vm1, %v249_v37, 0.0 }
 0x143   :  { %254 = vadd.xlane.f32.xlu0 %v253_v38 }
 0x1cc   :  { %v252_v40 = vpop.xlane.xlu0 %251 }
 0x1cd   :  { %v263_v43 = vrot.slane %v252_v40, %v849_v41 }
 0x1d0   :  { %v255_v42 = vpop.xlane.xlu0 %254 }
 0x1d1   :  { %v267_v44 = vrot.slane %v255_v42, %v849_v41 }
 0x1d3   :  { %v269_v45 = vsel %vm268_vm2, %v267_v44, %v263_v43 }
 0x1d4   :  { %v272_v46 = vsel %vm271_vm3, %v269_v45, -inf }
 0x1d5   :  { %273 = vmax.xlane.f32.xlu1 %v272_v46 }
 0x262   :  { %v274_v49 = vpop.xlane.xlu1 %273 }
 0x263   :  { %v279_v50 = vrot.slane %v274_v49, %v839_v18  ;;  %v283_v51 = vrot.slane %v274_v49, %v282_v48 }
 0x265   :  { %v286_v52 = vsub.f32 %v252_v40, %v279_v50  ;;  %v287_v53 = vsub.f32 %v255_v42, %v283_v51 }
 0x267   :  { %v288_v54 = vmul.f32 1.442695, %v286_v52  ;;  %v290_v55 = vmul.f32 1.442695, %v287_v53 }
 0x269   :  { %571 = vpow2.f32 %v288_v54 }
 0x26a   :  { %573 = vpow2.f32 %v290_v55 }
 0x273   :  { %v572_v56 = vpop.eup %571 }
 0x274   :  { %v574_v57 = vpop.eup %573  ;;  %295 = vperm.xlu1 %560, %v572_v56  }
 0x275   :  { %298 = vperm.xlu0 %561, %v574_v57  }
 0x2f3   :  { %v296_v58 = vpop.permute.xlu1 %295 }
 0x2f4   :  { %v299_v59 = vpop.permute.xlu0 %298  ;;  %v303_v60 = vrot.slane %v296_v58, %v849_v41 }
 0x2f5   :  { %v307_v61 = vrot.slane %v299_v59, %v849_v41 }
 0x2f7   :  { %v308_v62 = vsel %vm268_vm2, %v307_v61, %v303_v60 }
 0x2f8   :  { %v310_v63 = vsel %vm271_vm3, %v308_v62, 0.0 }
 0x2f9   :  { %311 = vadd.xlane.f32.xlu1 %v310_v63 }
 0x386   :  { %v312_v0 = vpop.xlane.xlu1 %311 }
 0x387   :  { %575 = vrcp.f32 %v312_v0 }
 0x391   :  { %v576_v1 = vpop.eup %575 }
 0x392   :  { %v318_v2 = vrot.slane %v576_v1, %v839_v18  ;;  %v322_v3 = vrot.slane %v576_v1, %v282_v48 }
 0x394   :  { %v325_v4 = vmul.f32 %v572_v56, %v318_v2  ;;  %v326_v7 = vmul.f32 %v574_v57, %v322_v3 }
 0x396   :  { %330 = vperm.xlu1 %560, %v325_v4   ;;  %v347_v8 = vpack.c.bf16 %v326_v7, %v326_v7  ;;  %v346_v11 = vpack.c.bf16 %v325_v4, %v325_v4 }
 0x398   :  { %v407_v10 = vunpack.c.l.b16 %v347_v8  ;;  %v349_v12 = vunpack.c.l.b16 %v346_v11 }
 0x39a   :  { %409 = vperm.xlu0 %561, %v407_v10  }
 0x39e   :  { %351 = vperm.xlu0 %561, %v349_v12  }
 0x3a2   :  { %333 = vperm.xlu0 %561, %v326_v7  }
 0x415   :  { %v331_v6 = vpop.permute.xlu1 %330 }
 0x416   :  { %v338_v21 = vrot.slane %v331_v6, %v849_v41 }
 0x419   :  { %v410_v14 = vpop.permute.xlu0 %409 }
 0x41a   :  { %v414_v15 = vrot.slane %v410_v14, %v849_v41 }
 0x41c   :  { %v415_v16 = vpack.c.b16 %v414_v15, %v414_v15 }
 0x41d   :  { %v352_v17 = vpop.permute.xlu0 %351 }
 0x41e   :  { %v356_v18 = vrot.slane %v352_v17, %v849_v41  ;;  %545 = vmatmul.mubr.msk.bf16.vlgmr.msra.gmra.mrb[4].mxu1 %vm358_vm5, %v415_v16 }
 0x420   :  { %v357_v19 = vpack.c.b16 %v356_v18, %v356_v18 }
 0x421   :  { %v334_v20 = vpop.permute.xlu0 %333 }
 0x422   :  { %v342_v22 = vrot.slane %v334_v20, %v849_v41  ;;  %539 = vmatmul.mubr.msk.bf16.vlgmr.msra.gmra.mrb[4].mxu0 %vm358_vm5, %v357_v19 }
 0x424   :  { %v343_v5 = vsel %vm268_vm2, %v342_v22, %v338_v21 }
 0x425   :  { %345 = vst.msk [vmem:[#allocation10] sm:$0x3] %vm271_vm3, %v343_v5 }
 0x426   :  { %676 = shalt.err (!%p673_p8)
}
 0x427   :  { %s677_s25 = scalar_lea.hbm %s900_s5, 32 }
 0x428   :  { %p678_p9 = scmp.ne.s32.totalorder %s900_s5, %s677_s25  ;;  %p681_p10 = scmp.lt.u32.totalorder %s677_s25, %s900_s5 }
 0x42a   :  { %p683_p11 = pnand %p681_p10, %p678_p9 }
 0x42c   :  { %686 = shalt.err (!%p683_p11)
}
 0x42d   :  { %478 = dma.vmem_to_hbm [thread:$0]  %s476_s8, 32, %s900_s5, [#allocation4]   ;;  %vm467_vm6 = vcmask 254976  }
 0x42e   :  { %s730_s10 = smov [#allocation11]  }
 0x42f   :  { %s485_s0 = sshll.u32 %s730_s10, 4  ;;  %s486_s0 = int_to_ptr.vmem [resolvable:$true] %s485_s0 }
 0x430   :  { %s687_s11 = scalar_lea.vmem %s486_s0, 32  ;;  %p692_p13 = scmp.lt.s32.totalorder %s486_s0, %s486_s0 }
 0x431   :  { %p688_p12 = scmp.ne.s32.totalorder %s486_s0, %s687_s11  ;;  %p693_p0 = scmp.lt.s32.totalorder %s687_s11, %s687_s11 }
 0x433   :  { %p694_p1 = por %p693_p0, %p692_p13 }
 0x435   :  { %p695_p2 = pnand %p694_p1, %p688_p12 }
 0x4f1   :  { %v456_v23 = vpop.f32.mrb[4].mxu1 }
 0x4f2   :  { %v546_v24 = vpop.f32.mrb[5].mxu1  ;;  %v464_v26 = vrot.slane %v456_v23, 7 }
 0x4f3   :  { %v459_v25 = vpop.f32.mrb[6].mxu1 }
 0x4f4   :  { %v547_v27 = vpop.f32.mrb[7].mxu1 }
 0x4f5   :  { %v400_v28 = vpop.f32.mrb[4].mxu0 }
 0x4f6   :  { %v465_v29 = vsel %vm268_vm2, %v464_v26, %v400_v28  ;;  %v540_v30 = vpop.f32.mrb[5].mxu0 }
 0x4f7   :  { %v403_v31 = vpop.f32.mrb[6].mxu0  ;;  %468 = vst.msk [vmem:[#allocation11] sm:$0x3] %vm467_vm6, %v465_v29 }
 0x4f8   :  { %v541_v32 = vpop.f32.mrb[7].mxu0 }
 0x4f9   :  { %698 = shalt.err (!%p695_p2)
}
 0x4fa   :  { %s699_s13 = scalar_lea.hbm %s901_s6, 32 }
 0x4fb   :  { %p700_p3 = scmp.ne.s32.totalorder %s901_s6, %s699_s13  ;;  %p703_p4 = scmp.lt.u32.totalorder %s699_s13, %s901_s6 }
 0x4fd   :  { %p705_p5 = pnand %p703_p4, %p700_p3 }
 0x4ff   :  { %708 = shalt.err (!%p705_p5)
}
 0x500   :  { %488 = dma.vmem_to_hbm [thread:$0]  %s486_s0, 32, %s901_s6, [#allocation12]  }
 0x501   :  { %715 = dma.done.wait [#allocation4], 32  }
 0x502   :  { %716 = vsyncadd [#allocation4], 4294967264 }
 0x503   :  { %717 = dma.done.wait [#allocation12], 32  }
 0x504   :  { %718 = vsyncadd [#allocation12], 4294967264 }
 0x505   :  { %495 = vsyncpa [#allocation3], 1 }
 0x506   :  { %496 = vsyncpa [#allocation6], 1 }
 0x507   :  { %497 = vsyncpa [#allocation9], 1 }
 0x508   :  { %498 = vsyncpa [#allocation4], 1 }
 0x509   :  { %499 = vsyncpa [#allocation12], 1 }

</bundles_post_ra>
